<compile_context>
chip_gen: v7x
topology: tpu7x:2x2x1
jax: 0.10.0
libtpu: 0.0.40
codegen_flags: <defaults>
</compile_context>

<pallas_src>
import math

import jax
import jax.numpy as jnp
from jax import lax
from jax.experimental import pallas as pl
from jax.experimental.pallas import tpu as pltpu


def _lane(n):
    return ((n + 127) // 128) * 128


def _sub(n):
    return ((n + 7) // 8) * 8


def _vmem_bytes(tq, S, D, qkv_bytes, attn_bytes, has_dir, has_dist):
    """Rough scoped-VMEM estimate: double-buffered blocks + in-body f32 temporaries."""
    f32 = 4
    blocks = 2 * (
        _sub(tq) * _lane(D) * qkv_bytes          # q tile
        + 2 * _sub(S) * _lane(D) * qkv_bytes     # k, v (resident over qi)
        + _sub(tq) * _lane(1) * f32              # rep_mask rows (TQ,1)
        + _sub(1) * _lane(S) * f32               # rep_mask keys (1,S)
        + _sub(tq) * _lane(D) * f32              # out tile
        + _sub(tq) * _lane(S) * attn_bytes       # attn tile
    )
    n_big = 6 + 2 * int(has_dir) + 3 * int(has_dist)   # (TQ,S)-sized temporaries
    temps = f32 * (_sub(tq) * _lane(S) * n_big + 3 * _sub(tq) * _lane(D))
    return blocks + temps


def _pick_tq(S, est_fn, budget=40 << 20):
    """Largest query tile (<=256, multiple of 8 dividing S, or S itself) within budget."""
    cands = set()
    if S <= 256:
        cands.add(S)                      # full-S block is always a legal block dim
    for t in (256, 128, 64, 32, 16, 8):
        if t <= S and S % t == 0:
            cands.add(t)
    if not cands:
        cands.add(S)
    cands = sorted(cands, reverse=True)
    for t in cands:
        if est_fn(t) <= budget:
            return t
    return cands[-1]


def _build_kernel(has_dir, has_dist, direction, alpha, scale, TQ, S, f32_matmul):
    """Kernel over one (batch, query-tile) grid step."""
    f32 = jnp.float32
    # f32 path: HIGHEST precision matmuls to match the reference within 2e-3.
    # bf16 path (v5e/v6e/v7x fast path): native bf16 MXU, f32 accumulation.
    precision = lax.Precision.HIGHEST if f32_matmul else None

    def kernel(q_ref, k_ref, v_ref, rm_col_ref, rm_row_ref, out_ref, attn_ref):
        # 1/sqrt(d_model) folded into the (TQ, D) q tile (cheaper than scaling (TQ, S)).
        q_ = q_ref[0] * scale                        # (TQ, D) input dtype
        k_ = k_ref[0]                                # (S,  D)
        v_ = v_ref[0]                                # (S,  D)
        m_col = rm_col_ref[0]                        # (TQ, 1) f32 query-row validity
        m_row = rm_row_ref[0]                        # (1,  S) f32 key-column validity

        # scores = (q / sqrt(d)) @ k^T, f32 accumulation on the MXU.
        scores = lax.dot_general(
            q_, k_,
            dimension_numbers=(((1,), (1,)), ((), ())),
            preferred_element_type=f32,
            precision=precision,
        )                                            # (TQ, S) f32

        mask = m_row                                 # broadcasts against (TQ, S)
        if has_dir or has_dist:
            row = pl.program_id(1) * TQ + lax.broadcasted_iota(jnp.int32, (TQ, S), 0)
            col = lax.broadcasted_iota(jnp.int32, (TQ, S), 1)
        if has_dir:
            # 'fw' -> tril(diag=-1) i.e. i>j ; else triu(diag=1) i.e. j>i.
            dmask = (row > col) if direction == 'fw' else (col > row)
            mask = mask * dmask.astype(f32)
        if has_dist:
            scores = scores + alpha * (-jnp.abs(row - col).astype(f32))

        # masked_softmax — exact PyTorch-reference semantics, all element-wise math f32.
        masked_vec = scores * mask
        max_vec = jnp.max(masked_vec, axis=-1, keepdims=True)
        exps = jnp.exp(masked_vec - max_vec)
        masked_exps = exps * mask
        masked_sums = jnp.sum(masked_exps, axis=-1, keepdims=True)
        masked_sums = masked_sums + (masked_sums == 0).astype(f32)
        # Exact (TQ,1) divide (approx reciprocal was outside tolerance), fused with the
        # rep_mask row factor (m1 of rep_mask_tile) so only one (TQ,S) multiply follows.
        inv = m_col / (masked_sums + 1e-20)
        attn = masked_exps * inv                     # (TQ, S) f32

        out = jnp.dot(attn.astype(v_.dtype), v_,
                      preferred_element_type=f32, precision=precision)

        out_ref[0] = out.astype(out_ref.dtype)
        attn_ref[0] = attn.astype(attn_ref.dtype)

    return kernel


def attention(q, k, v, rep_mask, *, direction=None, alpha=1.0, dist_mask=False,
              tq=None, mxu_dtype=None, attn_dtype=jnp.float32):
    """Pallas implementation of Attention.forward(q, k, v, rep_mask).

    q, k, v:    (B, S, D) float32
    rep_mask:   (B, S, 1) float32 (0/1 validity mask)
    mxu_dtype:  None -> f32 HIGHEST matmuls; jnp.bfloat16 -> bf16 MXU operands (cast in
                the wrapper so K/V DMA bytes are halved), f32 accumulation/softmax.
    attn_dtype: dtype of the (B,S,S) attention output (f32 default; bf16 halves its
                HBM writeback, the dominant traffic at large S).
    returns:    out (B, S, D) in q.dtype, attn (B, S, S) in attn_dtype.
    """
    B, S, D = q.shape
    assert k.shape == (B, S, D) and v.shape == (B, S, D)
    assert rep_mask.shape == (B, S, 1)
    scale = 1.0 / math.sqrt(D)
    has_dir = direction is not None
    has_dist = bool(dist_mask)

    # bf16 fast path: cast once in the wrapper (halves K/V HBM->VMEM bytes, removes
    # per-step cast passes in the kernel).  Softmax math stays f32 in the kernel.
    if mxu_dtype is not None:
        qc, kc, vc = q.astype(mxu_dtype), k.astype(mxu_dtype), v.astype(mxu_dtype)
    else:
        qc, kc, vc = q, k, v

    rm_col = rep_mask.astype(jnp.float32)                    # (B, S, 1) query rows
    rm_row = rep_mask.astype(jnp.float32).reshape(B, 1, S)   # (B, 1, S) key columns

    qkv_bytes = jnp.dtype(qc.dtype).itemsize
    attn_bytes = jnp.dtype(attn_dtype).itemsize
    est = lambda t: _vmem_bytes(t, S, D, qkv_bytes, attn_bytes, has_dir, has_dist)

    TQ = _pick_tq(S, est) if tq is None else int(tq)
    if S % TQ != 0 or (TQ != S and TQ % 8 != 0):
        TQ = S
    nq = S // TQ

    # Scoped-VMEM budget from the chosen blocks, capped at 48 MiB so the same setting is
    # legal on v7x (64 MiB physical) as well as v5e/v6e (128 MiB).
    vmem_limit = int(min(48 << 20, max(32 << 20, est(TQ) + (16 << 20))))

    kernel = _build_kernel(has_dir, has_dist, direction, float(alpha), scale, TQ, S,
                           f32_matmul=(mxu_dtype is None))

    # Grid order is (batch, query-tile): the query-tile axis MUST stay innermost so the
    # K/V blocks (index_map constant in qi) remain resident across consecutive steps.
    in_specs = [
        pl.BlockSpec((1, TQ, D), lambda b, qi: (b, qi, 0)),   # q tile
        pl.BlockSpec((1, S, D), lambda b, qi: (b, 0, 0)),     # k (resident over qi)
        pl.BlockSpec((1, S, D), lambda b, qi: (b, 0, 0)),     # v (resident over qi)
        pl.BlockSpec((1, TQ, 1), lambda b, qi: (b, qi, 0)),   # rep_mask rows
        pl.BlockSpec((1, 1, S), lambda b, qi: (b, 0, 0)),     # rep_mask keys
    ]
    out_specs = (
        pl.BlockSpec((1, TQ, D), lambda b, qi: (b, qi, 0)),
        pl.BlockSpec((1, TQ, S), lambda b, qi: (b, qi, 0)),   # lane-dense attn tile
    )
    out_shape = (jax.ShapeDtypeStruct((B, S, D), q.dtype),
                 jax.ShapeDtypeStruct((B, S, S), attn_dtype))

    out, attn = pl.pallas_call(
        kernel,
        grid=(B, nq),
        in_specs=in_specs,
        out_specs=out_specs,
        out_shape=out_shape,
        compiler_params=pltpu.CompilerParams(
            dimension_semantics=("parallel", "parallel"),
            vmem_limit_bytes=vmem_limit,
        ),
    )(qc, kc, vc, rm_col, rm_row)
    return out, attn


def attention_ref(q, k, v, rep_mask, *, direction=None, alpha=1.0, dist_mask=False):
    """Pure-JAX reference mirroring the PyTorch module exactly."""
    B, S, D = q.shape
    attn = jnp.einsum('bsd,btd->bst', q, k,
                      precision=lax.Precision.HIGHEST) / math.sqrt(D)
    m1 = rep_mask.reshape(B, S, 1)
    m2 = rep_mask.reshape(B, 1, S)
    mask = m1 * m2
    i = jnp.arange(S)[:, None]
    j = jnp.arange(S)[None, :]
    if direction is not None:
        if direction == 'fw':
            dmask = (i > j).astype(jnp.float32)
        else:
            dmask = (j > i).astype(jnp.float32)
        mask = mask * dmask[None]
    if dist_mask:
        attn = attn + alpha * (-jnp.abs(i - j).astype(jnp.float32))[None]
    masked_vec = attn * mask
    max_vec = jnp.max(masked_vec, axis=2, keepdims=True)
    exps = jnp.exp(masked_vec - max_vec)
    masked_exps = exps * mask
    masked_sums = jnp.sum(masked_exps, axis=2, keepdims=True)
    masked_sums = masked_sums + (masked_sums == 0).astype(jnp.float32)
    attn = masked_exps / (masked_sums + 1e-20)
    out = jnp.einsum('bst,btd->bsd', attn, v, precision=lax.Precision.HIGHEST)
    return out, attn


if __name__ == "__main__":
    key = jax.random.PRNGKey(0)

    # --- small shape consistent with the module: B=2, S=8, d_model=32 ---
    B, S, D = 2, 8, 32
    kq, kk, kv = jax.random.split(key, 3)
    q = jax.random.normal(kq, (B, S, D), dtype=jnp.float32)
    k = jax.random.normal(kk, (B, S, D), dtype=jnp.float32)
    v = jax.random.normal(kv, (B, S, D), dtype=jnp.float32)
    lengths = jnp.array([8, 5])
    rep_mask = (jnp.arange(S)[None, :] < lengths[:, None]).astype(jnp.float32)[..., None]

    # 1) Default config (direction=None, dist_mask=False), full-precision path.
    out, attn = attention(q, k, v, rep_mask)
    jax.block_until_ready((out, attn))
    out_r, attn_r = attention_ref(q, k, v, rep_mask)
    assert jnp.allclose(out, out_r, atol=2e-3, rtol=2e-3)
    assert jnp.allclose(attn, attn_r, atol=2e-3, rtol=2e-3)

    # 2) Directional + distance-mask config (masks generated in-kernel via iota).
    out2, attn2 = attention(q, k, v, rep_mask, direction='fw', alpha=0.5, dist_mask=True)
    jax.block_until_ready((out2, attn2))
    out2_r, attn2_r = attention_ref(q, k, v, rep_mask, direction='fw', alpha=0.5,
                                    dist_mask=True)
    assert jnp.allclose(out2, out2_r, atol=2e-3, rtol=2e-3)
    assert jnp.allclose(attn2, attn2_r, atol=2e-3, rtol=2e-3)

    # 3) bf16-MXU fast path: bf16 operands cast in the wrapper, f32 accumulation/softmax.
    out3, attn3 = attention(q, k, v, rep_mask, mxu_dtype=jnp.bfloat16)
    jax.block_until_ready((out3, attn3))
    assert jnp.allclose(out3, out_r, atol=5e-2, rtol=5e-2)
    assert jnp.allclose(attn3, attn_r, atol=5e-2, rtol=5e-2)

    # 4) Larger shape exercising query-axis tiling (grid=(2,2)), partially masked batch,
    #    'bw' direction mask and the distance bias (protects the post-norm m_col invariant).
    B2, S2, D2 = 2, 256, 64
    ka, kb, kc = jax.random.split(jax.random.PRNGKey(1), 3)
    q2 = jax.random.normal(ka, (B2, S2, D2), dtype=jnp.float32)
    k2 = jax.random.normal(kb, (B2, S2, D2), dtype=jnp.float32)
    v2 = jax.random.normal(kc, (B2, S2, D2), dtype=jnp.float32)
    lengths2 = jnp.array([256, 150])
    rep_mask2 = (jnp.arange(S2)[None, :] < lengths2[:, None]).astype(jnp.float32)[..., None]
    out4, attn4 = attention(q2, k2, v2, rep_mask2, direction='bw', alpha=0.3,
                            dist_mask=True, tq=128)
    jax.block_until_ready((out4, attn4))
    out4_r, attn4_r = attention_ref(q2, k2, v2, rep_mask2, direction='bw', alpha=0.3,
                                    dist_mask=True)
    assert jnp.allclose(out4, out4_r, atol=2e-3, rtol=2e-3)
    assert jnp.allclose(attn4, attn4_r, atol=2e-3, rtol=2e-3)

    # 5) bf16 attn output option (halves the dominant (B,S,S) writeback).
    out5, attn5 = attention(q, k, v, rep_mask, attn_dtype=jnp.bfloat16)
    jax.block_until_ready((out5, attn5))
    assert jnp.allclose(out5, out_r, atol=2e-3, rtol=2e-3)
    assert jnp.allclose(attn5.astype(jnp.float32), attn_r, atol=2e-2, rtol=2e-2)

    print("KERNEL_OK")
</pallas_src>

<mosaic_0001>
module attributes {stable_mosaic.version = 11 : i64} {
  func.func @kernel(%arg0: i32, %arg1: i32, %arg2: memref<1x8x32xf32, #tpu.memory_space<vmem>>, %arg3: memref<1x8x32xf32, #tpu.memory_space<vmem>>, %arg4: memref<1x8x32xf32, #tpu.memory_space<vmem>>, %arg5: memref<1x8x1xf32, #tpu.memory_space<vmem>>, %arg6: memref<1x1x8xf32, #tpu.memory_space<vmem>>, %arg7: memref<1x8x32xf32, #tpu.memory_space<vmem>>, %arg8: memref<1x8x8xf32, #tpu.memory_space<vmem>>) attributes {dimension_semantics = [#tpu.dimension_semantics<parallel>, #tpu.dimension_semantics<parallel>], iteration_bounds = array<i64: 2, 1>, scalar_prefetch = 0 : i64, scratch_operands = 0 : i64, tpu.core_type = #tpu.core_type<tc>, window_params = [{transform_indices = @transform_0, window_bounds = array<i64: 1, 8, 32>}, {transform_indices = @transform_1, window_bounds = array<i64: 1, 8, 32>}, {transform_indices = @transform_2, window_bounds = array<i64: 1, 8, 32>}, {transform_indices = @transform_3, window_bounds = array<i64: 1, 8, 1>}, {transform_indices = @transform_4, window_bounds = array<i64: 1, 1, 8>}, {transform_indices = @transform_5, window_bounds = array<i64: 1, 8, 32>}, {transform_indices = @transform_6, window_bounds = array<i64: 1, 8, 8>}]} {
    %c0 = arith.constant 0 : index
    %c0_0 = arith.constant 0 : index
    %c0_1 = arith.constant 0 : index
    %0 = vector.load %arg2[%c0, %c0_0, %c0_1] : memref<1x8x32xf32, #tpu.memory_space<vmem>>, vector<1x8x32xf32>
    %1 = vector.shape_cast %0 : vector<1x8x32xf32> to vector<8x32xf32>
    %cst = arith.constant 0.176776692 : f32
    %2 = vector.broadcast %cst : f32 to vector<8x32xf32>
    %3 = arith.mulf %1, %2 : vector<8x32xf32>
    %c0_2 = arith.constant 0 : index
    %c0_3 = arith.constant 0 : index
    %c0_4 = arith.constant 0 : index
    %4 = vector.load %arg3[%c0_2, %c0_3, %c0_4] : memref<1x8x32xf32, #tpu.memory_space<vmem>>, vector<1x8x32xf32>
    %5 = vector.shape_cast %4 : vector<1x8x32xf32> to vector<8x32xf32>
    %c0_5 = arith.constant 0 : index
    %c0_6 = arith.constant 0 : index
    %c0_7 = arith.constant 0 : index
    %6 = vector.load %arg4[%c0_5, %c0_6, %c0_7] : memref<1x8x32xf32, #tpu.memory_space<vmem>>, vector<1x8x32xf32>
    %7 = vector.shape_cast %6 : vector<1x8x32xf32> to vector<8x32xf32>
    %c0_8 = arith.constant 0 : index
    %c0_9 = arith.constant 0 : index
    %c0_10 = arith.constant 0 : index
    %8 = vector.load %arg5[%c0_8, %c0_9, %c0_10] : memref<1x8x1xf32, #tpu.memory_space<vmem>>, vector<1x8x1xf32>
    %9 = vector.shape_cast %8 : vector<1x8x1xf32> to vector<8x1xf32>
    %c0_11 = arith.constant 0 : index
    %c0_12 = arith.constant 0 : index
    %c0_13 = arith.constant 0 : index
    %10 = vector.load %arg6[%c0_11, %c0_12, %c0_13] : memref<1x1x8xf32, #tpu.memory_space<vmem>>, vector<1x1x8xf32>
    %11 = vector.shape_cast %10 : vector<1x1x8xf32> to vector<1x8xf32>
    %cst_14 = arith.constant dense<0.000000e+00> : vector<8x8xf32>
    %12 = tpu.matmul %3, %5, %cst_14 {dimension_numbers = #tpu.dot_dimension_numbers<[1], [1], [0], [0], [0, 0, 1, 0], [], []>, precision = #tpu.contract_precision<fp32>} : vector<8x32xf32>, vector<8x32xf32>, vector<8x8xf32> -> vector<8x8xf32>
    %13 = vector.broadcast %11 : vector<1x8xf32> to vector<8x8xf32>
    %14 = arith.mulf %12, %13 : vector<8x8xf32>
    %cst_15 = arith.constant dense<0xFF800000> : vector<8xf32>
    %15 = vector.multi_reduction <maximumf>, %14, %cst_15 [1] : vector<8x8xf32> to vector<8xf32>
    %16 = vector.shape_cast %15 : vector<8xf32> to vector<8x1xf32>
    %17 = vector.broadcast %16 : vector<8x1xf32> to vector<8x8xf32>
    %18 = arith.subf %14, %17 : vector<8x8xf32>
    %19 = math.exp %18 : vector<8x8xf32>
    %20 = vector.broadcast %11 : vector<1x8xf32> to vector<8x8xf32>
    %21 = arith.mulf %19, %20 : vector<8x8xf32>
    %cst_16 = arith.constant dense<0.000000e+00> : vector<8xf32>
    %22 = vector.multi_reduction <add>, %21, %cst_16 [1] : vector<8x8xf32> to vector<8xf32>
    %23 = vector.shape_cast %22 : vector<8xf32> to vector<8x1xf32>
    %cst_17 = arith.constant 0.000000e+00 : f32
    %24 = vector.broadcast %cst_17 : f32 to vector<8x1xf32>
    %25 = arith.cmpf oeq, %23, %24 : vector<8x1xf32>
    %26 = arith.extui %25 : vector<8x1xi1> to vector<8x1xi32>
    %27 = arith.sitofp %26 : vector<8x1xi32> to vector<8x1xf32>
    %28 = arith.addf %23, %27 : vector<8x1xf32>
    %cst_18 = arith.constant 9.99999968E-21 : f32
    %29 = vector.broadcast %cst_18 : f32 to vector<8x1xf32>
    %30 = arith.addf %28, %29 : vector<8x1xf32>
    %31 = arith.divf %9, %30 : vector<8x1xf32>
    %32 = vector.broadcast %31 : vector<8x1xf32> to vector<8x8xf32>
    %33 = arith.mulf %21, %32 : vector<8x8xf32>
    %cst_19 = arith.constant dense<0.000000e+00> : vector<8x32xf32>
    %34 = tpu.matmul %33, %7, %cst_19 {dimension_numbers = #tpu.dot_dimension_numbers<[1], [0], [0], [1], [0, 0, 1, 1], [], []>, precision = #tpu.contract_precision<fp32>} : vector<8x8xf32>, vector<8x32xf32>, vector<8x32xf32> -> vector<8x32xf32>
    %c0_20 = arith.constant 0 : index
    %c0_21 = arith.constant 0 : index
    %c0_22 = arith.constant 0 : index
    %35 = vector.load %arg7[%c0_20, %c0_21, %c0_22] : memref<1x8x32xf32, #tpu.memory_space<vmem>>, vector<1x8x32xf32>
    %36 = vector.shape_cast %35 : vector<1x8x32xf32> to vector<8x32xf32>
    %37 = vector.shape_cast %34 : vector<8x32xf32> to vector<1x8x32xf32>
    tpu.vector_store %arg7[%c0_20, %c0_21, %c0_22], %37 {strides = array<i32>} : memref<1x8x32xf32, #tpu.memory_space<vmem>>, vector<1x8x32xf32>,
    %c0_23 = arith.constant 0 : index
    %c0_24 = arith.constant 0 : index
    %c0_25 = arith.constant 0 : index
    %38 = vector.load %arg8[%c0_23, %c0_24, %c0_25] : memref<1x8x8xf32, #tpu.memory_space<vmem>>, vector<1x8x8xf32>
    %39 = vector.shape_cast %38 : vector<1x8x8xf32> to vector<8x8xf32>
    %40 = vector.shape_cast %33 : vector<8x8xf32> to vector<1x8x8xf32>
    tpu.vector_store %arg8[%c0_23, %c0_24, %c0_25], %40 {strides = array<i32>} : memref<1x8x8xf32, #tpu.memory_space<vmem>>, vector<1x8x8xf32>,
    return
  }
  func.func @transform_0(%arg0: i32, %arg1: i32) -> (i32, i32, i32) {
    %c0_i32 = arith.constant 0 : i32
    %c0_i32_0 = arith.constant 0 : i32
    return %arg0, %arg1, %c0_i32 : i32, i32, i32
  }
  func.func @transform_1(%arg0: i32, %arg1: i32) -> (i32, i32, i32) {
    %c0_i32 = arith.constant 0 : i32
    %c0_i32_0 = arith.constant 0 : i32
    %c0_i32_1 = arith.constant 0 : i32
    return %arg0, %c0_i32, %c0_i32_0 : i32, i32, i32
  }
  func.func @transform_2(%arg0: i32, %arg1: i32) -> (i32, i32, i32) {
    %c0_i32 = arith.constant 0 : i32
    %c0_i32_0 = arith.constant 0 : i32
    %c0_i32_1 = arith.constant 0 : i32
    return %arg0, %c0_i32, %c0_i32_0 : i32, i32, i32
  }
  func.func @transform_3(%arg0: i32, %arg1: i32) -> (i32, i32, i32) {
    %c0_i32 = arith.constant 0 : i32
    %c0_i32_0 = arith.constant 0 : i32
    return %arg0, %arg1, %c0_i32 : i32, i32, i32
  }
  func.func @transform_4(%arg0: i32, %arg1: i32) -> (i32, i32, i32) {
    %c0_i32 = arith.constant 0 : i32
    %c0_i32_0 = arith.constant 0 : i32
    %c0_i32_1 = arith.constant 0 : i32
    return %arg0, %c0_i32, %c0_i32_0 : i32, i32, i32
  }
  func.func @transform_5(%arg0: i32, %arg1: i32) -> (i32, i32, i32) {
    %c0_i32 = arith.constant 0 : i32
    %c0_i32_0 = arith.constant 0 : i32
    return %arg0, %arg1, %c0_i32 : i32, i32, i32
  }
  func.func @transform_6(%arg0: i32, %arg1: i32) -> (i32, i32, i32) {
    %c0_i32 = arith.constant 0 : i32
    %c0_i32_0 = arith.constant 0 : i32
    return %arg0, %arg1, %c0_i32 : i32, i32, i32
  }
}

</mosaic_0001>

<bundles_post_ra>
// kernel: tpu_custom_call.1
= control target key start
LH: loop header
LB: loop body
LE: loop exit
PB: predicated region body
PF: predicated region fallthrough
CT: control target
= control target key end

     0   :  { %s2302_s0 = inlined_call_operand.vmem [shape: f32[2,8,32], index: 0, kind: input, shape index: {}]   ;;  %s2303_s1 = inlined_call_operand.hbm [shape: f32[2,8,32], index: 1, kind: input, shape index: {}]   ;;  %s2304_s2 = inlined_call_operand.hbm [shape: f32[2,8,32], index: 2, kind: input, shape index: {}]   ;;  %s2305_s3 = inlined_call_operand.vmem [shape: f32[2,8,1], index: 3, kind: input, shape index: {}]   ;;  %s2306_s4 = inlined_call_operand.vmem [shape: f32[2,1,8], index: 4, kind: input, shape index: {}]   ;;  %s2307_s5 = inlined_call_operand.hbm [shape: f32[2,8,32], index: 5, kind: output, shape index: {0}]   ;;  %s2308_s6 = inlined_call_operand.hbm [shape: f32[2,8,8], index: 6, kind: output, shape index: {1}]  }
   0x1   :  { %2312 = sst [smem:[#allocation14_spill]] %s2303_s1 }
   0x2   :  { %12 = vsyncpa [#allocation3], 0 }
   0x3   :  { %14 = vsyncpa [#allocation3 + $0x1], 0 }
   0x4   :  { %15 = vsyncpa [#allocation6], 0 }
   0x5   :  { %17 = vsyncpa [#allocation6 + $0x1], 0 }
   0x6   :  { %18 = vsyncpa [#allocation4], 0 }
   0x7   :  { %20 = vsyncpa [#allocation4 + $0x1], 0 }
   0x8   :  { %21 = vsyncpa [#allocation9], 0 }
   0x9   :  { %23 = vsyncpa [#allocation9 + $0x1], 0  ;;  %s1980_s21 = smov 0   ;;  %s1982_s22 = smov 0  }
   0xa   :  { %s1984_s23 = smov 0   ;;  %s1986_s24 = smov 0  }
   0xb   :  { %s1988_s25 = smov 0   ;;  %s1990_s26 = smov 0  }
   0xc LB: > { %s1550_s27 = sadd.s32 4294967295, %s1936_s26   ;;  %s1551_s28 = sadd.s32 4294967294, %s1936_s26   ;;  %s1936_s26 = sphi %s1990_s26, %s29_s26   ;;  %s1932_s25 = sphi %s1988_s25, %s2332_s25   ;;  %s1928_s24 = sphi %s1986_s24, %s2331_s24   ;;  %s1924_s23 = sphi %s1984_s23, %s2330_s23   ;;  %s1920_s22 = sphi %s1982_s22, %s2329_s22   ;;  %s1916_s21 = sphi %s1980_s21, %s2328_s21  }
   0xd   : > { %s41_s29 = sadd.s32 1, %s1932_s25  ;;  %s76_s30 = sadd.s32 1, %s1924_s23 }
   0xe   : > { %p43_p0 = scmp.ge.s32.totalorder %s41_s29, 2  ;;  %p83_p1 = scmp.ne.s32.totalorder %s1924_s23, %s1920_s22 }
   0xf   : > { %p84_p2 = scmp.eq.s32.totalorder %s1936_s26, 0  ;;  %p89_p3 = scmp.ne.s32.totalorder %s1920_s22, %s1916_s21 }
  0x10   : > { %s2334_s29 = smov (%p43_p0, %s41_s29), 0  ;;  %p90_p5 = scmp.eq.s32.totalorder %s1550_s27, 0 }
  0x11   : > { %p2021_p4 = por %p84_p2, %p83_p1  ;;  %s73_s8 = ssub.s32 %s1932_s25, %s2334_s29 }
  0x12   : > { %p195_p6 = scmp.eq.s32.totalorder %s1550_s27, 1  ;;  %p74_p7 = scmp.eq.s32.totalorder %s73_s8, 0 }
  0x13   : > { %p2027_p8 = por %p90_p5, %p89_p3  ;;  %p201_p10 = scmp.eq.s32.totalorder %s1551_s28, 1 }
  0x14   : > { %p2031_p9 = por %p195_p6, %p83_p1  ;;  %p1699_p13 = scmp.lt.s32.totalorder %s1936_s26, 2 }
  0x15   : > { %s2314_s9 = scalar_select %p2027_p8, 1, 0 }
  0x16   : > { %s2315_s10 = scalar_select %p2031_p9, 1, 0 }
  0x17   : > { %s2036_s11 = scalar_select %p74_p7, %s1924_s23, %s76_s30  }
  0x18   : > { %p2038_p11 = por %p201_p10, %p89_p3  ;;  %s2045_s13 = sand.u32 1, %s1924_s23  }
  0x19   : > { %s2309_s14 = sshll.u32 %s2045_s13, 3  ;;  %s1555_s15 = sshll.u32 %s1932_s25, 7 }
  0x1a   : > { %s2316_s12 = scalar_select %p2038_p11, 1, 0 }
  0x1b   : > { %s2317_s1 = sld [smem:[#allocation14_spill]]  ;;  %s263_s19 = scalar_lea.vmem [#allocation2], %s2309_s14 }
  0x1c   : > { %s270_s20 = sshll.u32 %s263_s19, 4  ;;  %p2062_p0 = pnand %p1699_p13, %p2021_p4  ;;  %s2058_s20 = int_to_ptr.vmem [resolvable:$true] %s270_s20 }
  0x1d   : > { %s260_s28 = scalar_lea.sflag [#allocation3], %s2045_s13 }
  0x1e   : > { %p1760_p5 = pneg %p2062_p0 }
  0x21   : > { %s2054_s18 = scalar_lea.hbm %s2317_s1, %s1555_s15  ;;  %s1763_s7 = scalar_lea.hbm %s2317_s1, 256 }
  0x22   : > { %s1758_s30 = scalar_lea.hbm %s2054_s18, 128  ;;  %p1764_p4 = scmp.lt.u32.totalorder %s2054_s18, %s2317_s1 }
  0x23   : > { %p1759_p3 = scmp.ne.s32.totalorder %s2054_s18, %s1758_s30  ;;  %p1765_p10 = scmp.lt.u32.totalorder %s1763_s7, %s1758_s30 }
  0x24   : > { %p1767_p12 = scmp.lt.u32.totalorder %s1758_s30, %s2054_s18 }
  0x25   : > { %p1761_p6 = pnand %p1760_p5, %p1759_p3  ;;  %p1766_p13 = por %p1765_p10, %p1764_p4 }
  0x27   : > { %p1762_p7 = pneg %p1761_p6  ;;  %p1768_p1 = por %p1767_p12, %p1766_p13 }
  0x29   : > { %p1769_p2 = pnand %p1768_p1, %p1762_p7 }
  0x2b   : > { %1772 = shalt.err (!%p1769_p2)
}
  0x2c   : > { %s1773_s14 = scalar_lea.vmem %s2058_s20, 128  ;;  %s1938_s8 = smov [#allocation2]  }
  0x2d   : > { %p1774_p3 = scmp.ne.s32.totalorder %s2058_s20, %s1773_s14  ;;  %s1778_s16 = sshll.u32 %s1938_s8, 4  ;;  %s1779_s16 = int_to_ptr.vmem [resolvable:$false] %s1778_s16 }
  0x2e   : > { %s1780_s17 = scalar_lea.vmem %s1779_s16, 256  ;;  %p1781_p9 = scmp.lt.s32.totalorder %s2058_s20, %s1779_s16 }
  0x2f   : > { %p1776_p6 = pnand %p1774_p3, %p1760_p5  ;;  %p1782_p4 = scmp.lt.s32.totalorder %s1780_s17, %s1773_s14 }
  0x31   : > { %p1777_p11 = pneg %p1776_p6  ;;  %p1783_p10 = por %p1782_p4, %p1781_p9 }
  0x33   : > { %p1784_p12 = pnand %p1783_p10, %p1777_p11 }
  0x35   : > { %1787 = shalt.err (!%p1784_p12)
}
  0x36   : > { %1688 = dma.hbm_to_vmem [thread:$0]  (!%p2062_p0), %s2054_s18, 128, %s2058_s20, %s260_s28  }
  0x37   : > { %p2319_p1 = scmp.lt.s32.totalorder %s1936_s26, 3  ;;  %p2320_p2 = scmp.ge.s32.totalorder %s1936_s26, 1 }
  0x38   : > { %s2107_s19 = scalar_lea.hbm %s2304_s2, %s1555_s15  ;;  %s2322_s8 = sshll.u32 %s2045_s13, 3 }
  0x39   : > { %p2098_p7 = pnand %p2320_p2, %p2319_p1  ;;  %s281_s16 = scalar_lea.vmem [#allocation5], %s2322_s8 }
  0x3a   : > { %s288_s17 = sshll.u32 %s281_s16, 4  ;;  %s278_s18 = scalar_lea.sflag [#allocation6], %s2045_s13  ;;  %s289_s17 = int_to_ptr.vmem [resolvable:$true] %s288_s17 }
  0x3b   : > { %s2321_s30 = scalar_select %p2098_p7, 1, 0 }
  0x3c   : > { %s1788_s20 = scalar_lea.hbm %s2107_s19, 128  ;;  %s1793_s15 = scalar_lea.hbm %s2304_s2, 256 }
  0x3d   : > { %p1789_p9 = scmp.ne.s32.totalorder %s2107_s19, %s1788_s20  ;;  %p1794_p3 = scmp.lt.u32.totalorder %s2107_s19, %s2304_s2 }
  0x3e   : > { %p1795_p6 = scmp.lt.u32.totalorder %s1793_s15, %s1788_s20  ;;  %p1797_p10 = scmp.lt.u32.totalorder %s1788_s20, %s2107_s19 }
  0x3f   : > { %p1791_p11 = pnand %p1789_p9, %p1760_p5 }
  0x40   : > { %p1796_p4 = por %p1795_p6, %p1794_p3 }
  0x41   : > { %p1792_p13 = pneg %p1791_p11 }
  0x42   : > { %p1798_p12 = por %p1797_p10, %p1796_p4 }
  0x44   : > { %p1799_p1 = pnand %p1798_p12, %p1792_p13 }
  0x46   : > { %1802 = shalt.err (!%p1799_p1)
}
  0x47   : > { %s1803_s13 = scalar_lea.vmem %s289_s17, 128  ;;  %s1939_s8 = smov [#allocation5]  }
  0x48   : > { %p1804_p2 = scmp.ne.s32.totalorder %s289_s17, %s1803_s13  ;;  %s1808_s1 = sshll.u32 %s1939_s8, 4  ;;  %s1809_s1 = int_to_ptr.vmem [resolvable:$false] %s1808_s1 }
  0x49   : > { %s1810_s16 = scalar_lea.vmem %s1809_s1, 256  ;;  %p1811_p8 = scmp.lt.s32.totalorder %s289_s17, %s1809_s1 }
  0x4a   : > { %p1806_p9 = pnand %p1804_p2, %p1760_p5  ;;  %p1812_p7 = scmp.lt.s32.totalorder %s1810_s16, %s1803_s13 }
  0x4c   : > { %p1807_p11 = pneg %p1806_p9  ;;  %p1813_p3 = por %p1812_p7, %p1811_p8 }
  0x4e   : > { %p1814_p6 = pnand %p1813_p3, %p1807_p11 }
  0x50   : > { %1817 = shalt.err (!%p1814_p6)
}
  0x51   : > { %1691 = dma.hbm_to_vmem [thread:$0]  (!%p2062_p0), %s2107_s19, 128, %s289_s17, %s278_s18  }
  0x52   : > { %p2323_p13 = scmp.ne.s32.totalorder %s2321_s30, 0 }
  0x53   : > { %s2134_s20 = sand.u32 (!%p2323_p13), 1, %s1920_s22   ;;  %p2324_p8 = scmp.ne.s32.totalorder (!%p2323_p13), %s2314_s9, 0 }
  0x54   : > { %313 = sbr.rel (%p2323_p13) target bundleno = 1097 (0x449), region = 40  ;;  %s2137_s28 = sshll.u32 (!%p2323_p13), %s2134_s20, 3 }
  0x55   : > { %s316_s15 = scalar_lea.sflag (!%p2323_p13), [#allocation3], %s2134_s20  ;;  %s319_s14 = scalar_lea.vmem (!%p2323_p13), [#allocation2], %s2137_s28 }
  0x5b   : > { %1899 = dma.done.wait (%p2324_p8), %s316_s15, 128  }
  0x5c   : > { %1901 = vsyncadd (%p2324_p8), %s316_s15, 4294967168  ;;  %s325_s27 = scalar_lea.sflag [#allocation6], %s2134_s20  ;;  %s328_s30 = scalar_lea.vmem [#allocation5], %s2137_s28 }
  0x5d   : > { %1903 = dma.done.wait (%p2324_p8), %s325_s27, 128  }
  0x5e   : > { %1905 = vsyncadd (%p2324_p8), %s325_s27, 4294967168  ;;  %p384_p0 = scmp.lt.s32.totalorder %s1928_s24, 1  ;;  %v1940_v0 = vmov 0.0   ;;  %vm1941_vm0 = vmmov 0   ;;  %v403_v1 = vld [vmem:[%s319_s14] sm:$0xff]  ;;  %vm407_vm1 = vcmask 261120  }
  0x5f   : > { %1597 = vmatprep.subr.mxu0 %v1940_v0  ;;  %1599 = vmatprep.mubr.msk.f32.mxu0 %vm1941_vm0, %v1940_v0  ;;  %v412_v3 = vsel %vm407_vm1, %v403_v1, 0  ;;  %vm867_vm2 = vcmask 64512   ;;  %v1942_v27 = vmov 0   ;;  %v404_v35 = vld [vmem:[%s328_s30] sm:$0xff]  ;;  %s383_s27 = scalar_lea.vmem [#allocation8], %s2137_s28  ;;  %s1569_s30 = sshll.u32 %s1928_s24, 7 }
  0x60   : > { %s2156_s19 = scalar_select %p384_p0, %s1928_s24, 1  ;;  %1627 = vmatprep.subr.mxu1 %v1940_v0  ;;  %1629 = vmatprep.mubr.msk.f32.mxu1 %vm1941_vm0, %v1940_v0  ;;  %v415_v5 = vand.u32 4294901760, %v412_v3  ;;  %v895_v36 = vand.u32 4294901760, %v404_v35 }
  0x61   : > { %1752 = vset.pattern.permute.xlu1 %v1942_v27  ;;  %1753 = vset.pattern.permute.xlu0 %v1942_v27  ;;  %s2224_s17 = scalar_lea.hbm %s2308_s6, %s1569_s30  ;;  %s1376_s18 = sshll.u32 %s383_s27, 4  ;;  %s1377_s18 = int_to_ptr.vmem [resolvable:$true] %s1376_s18 }
  0x62   : > { %s1563_s9 = sshll.u32 %s2156_s19, 3  ;;  %1598 = vmatpush3.xpose.msra.mxu0 %v415_v5  ;;  %v492_v7 = vsub.f32 %v412_v3, %v415_v5  ;;  %s400_s1 = scalar_lea.vmem %s2306_s4, %s2156_s19  ;;  %1628 = vmatpush3.msra.mxu1 %v895_v36  ;;  %v972_v37 = vsub.f32 %v404_v35, %v895_v36 }
  0x63   : > { %s390_s7 = scalar_lea.vmem %s2302_s0, %s1563_s9  ;;  %1602 = vmatprep.subr.mxu0 %v1940_v0  ;;  %v1565_v16 = vld [vmem:[%s400_s1] ss:$0 sm:$0xff]  ;;  %s397_s14 = scalar_lea.vmem %s2305_s3, %s1563_s9  ;;  %1632 = vmatprep.subr.mxu1 %v1940_v0 }
  0x64   : > { %v401_v2 = vld [vmem:[%s390_s7] sm:$0xff]  ;;  %v493_v10 = vand.u32 4294901760, %v492_v7  ;;  %v973_v41 = vand.u32 4294901760, %v972_v37  ;;  %s1348_s7 = scalar_lea.sflag [#allocation9], %s2134_s20  ;;  %s1818_s13 = scalar_lea.vmem %s1377_s18, 128 }
  0x65   : > { %v402_v4 = vmul.f32 0.17677669, %v401_v2  ;;  %v405_v32 = vld [vmem:[%s397_s14] sm:$0xff]  ;;  %p1819_p5 = scmp.ne.s32.totalorder %s1377_s18, %s1818_s13  ;;  %p2325_p7 = scmp.ne.s32.totalorder %s2315_s10, 0 }
  0x66   : > { %v494_v12 = vsub.f32 %v492_v7, %v493_v10  ;;  %v974_v44 = vsub.f32 %v972_v37, %v973_v41  ;;  %s1943_s8 = smov [#allocation8]  }
  0x67   : > { %v409_v6 = vsel %vm407_vm1, %v402_v4, 0  ;;  %p1820_p4 = pnand %p1819_p5, %p2325_p7  ;;  %s1822_s1 = sshll.u32 %s1943_s8, 4  ;;  %s1823_s1 = int_to_ptr.vmem [resolvable:$false] %s1822_s1 }
  0x68   : > { %v480_v8 = vand.u32 4294901760, %v409_v6  ;;  %v495_v14 = vand.u32 4294901760, %v494_v12  ;;  %v975_v47 = vand.u32 4294901760, %v974_v44  ;;  %s1824_s16 = scalar_lea.vmem %s1823_s1, 256  ;;  %p1825_p12 = scmp.lt.s32.totalorder %s1377_s18, %s1823_s1 }
  0x69   : > { %p1821_p10 = pneg %p1820_p4  ;;  %p1826_p1 = scmp.lt.s32.totalorder %s1824_s16, %s1818_s13 }
  0x6a   : > { %v481_v9 = vsub.f32 %v409_v6, %v480_v8 }
  0x6b   : > { %p1827_p2 = por %p1826_p1, %p1825_p12 }
  0x6c   : > { %v482_v11 = vand.u32 4294901760, %v481_v9 }
  0x6d   : > { %p1828_p9 = pnand %p1827_p2, %p1821_p10 }
  0x6e   : > { %v483_v13 = vsub.f32 %v481_v9, %v482_v11 }
  0x70   : > { %v484_v15 = vand.u32 4294901760, %v483_v13 }
  0x72   : > { %1600 = vmatmul.mubr.f32.vlgmr.msra.gmra.mrb[0].mxu0 %v484_v15 }
  0x73   : > { %1603 = vmatpush3.xpose.msra.mxu0 %v495_v14  ;;  %1604 = vmatprep.mubr.msk.f32.mxu0 %vm1941_vm0, %v1940_v0 }
  0x74   : > { %1607 = vmatprep.subr.mxu0 %v1940_v0 }
  0x7a   : > { %1605 = vmatmul.mubr.f32.vlgmr.msra.gmra.mrb[0].mxu0 %v480_v8 }
  0x7b   : > { %1608 = vmatpush3.xpose.msra.mxu0 %v492_v7  ;;  %1609 = vmatprep.mubr.msk.f32.mxu0 %vm1941_vm0, %v1940_v0 }
  0x7c   : > { %1612 = vmatprep.subr.mxu0 %v1940_v0 }
  0x82   : > { %1610 = vmatmul.mubr.f32.vlgmr.msra.gmra.mrb[0].mxu0 %v481_v9 }
  0x83   : > { %1613 = vmatpush3.xpose.msra.mxu0 %v415_v5  ;;  %1614 = vmatprep.mubr.msk.f32.mxu0 %vm1941_vm0, %v1940_v0 }
  0x84   : > { %1617 = vmatprep.subr.mxu0 %v1940_v0 }
  0x8a   : > { %1615 = vmatmul.mubr.f32.vlgmr.msra.gmra.mrb[0].mxu0 %v482_v11 }
  0x8b   : > { %1618 = vmatpush3.xpose.msra.mxu0 %v493_v10  ;;  %1619 = vmatprep.mubr.msk.f32.mxu0 %vm1941_vm0, %v1940_v0 }
  0x8c   : > { %1622 = vmatprep.subr.mxu0 %v1940_v0 }
  0x92   : > { %1620 = vmatmul.mubr.f32.vlgmr.msra.gmra.mrb[0].mxu0 %v480_v8 }
  0x93   : > { %1623 = vmatpush3.xpose.msra.mxu0 %v415_v5  ;;  %1624 = vmatprep.mubr.msk.f32.mxu0 %vm1941_vm0, %v1940_v0 }
  0x9a   : > { %1625 = vmatmul.mubr.f32.vlgmr.msra.gmra.mrb[0].mxu0 %v480_v8 }
 0x16d   : > { %v856_v17 = vpop.f32.mrb[0].mxu0 }
 0x16e   : > { %v866_v18 = vmul.f32 %v1565_v16, %v856_v17  ;;  %v1626_v19 = vpop.f32.mrb[1].mxu0 }
 0x170   : > { %v868_v20 = vsel %vm867_vm2, %v866_v18, -inf }
 0x171   : > { %869 = vmax.xlane.f32.xlu0 %v868_v20 }
 0x1fe   : > { %v870_v21 = vpop.xlane.xlu0 %869 }
 0x1ff   : > { %v871_v22 = vsub.f32 %v866_v18, %v870_v21 }
 0x201   : > { %v872_v23 = vmul.f32 1.442695, %v871_v22 }
 0x203   : > { %1754 = vpow2.f32 %v872_v23 }
 0x20d   : > { %v1755_v24 = vpop.eup %1754 }
 0x20e   : > { %v874_v25 = vmul.f32 %v1755_v24, %v1565_v16 }
 0x210   : > { %v875_v26 = vsel %vm867_vm2, %v874_v25, 0.0 }
 0x211   : > { %876 = vadd.xlane.f32.xlu0 %v875_v26 }
 0x29e   : > { %v877_v28 = vpop.xlane.xlu0 %876 }
 0x29f   : > { %vm878_vm3 = vcmp.eq.f32.partialorder %v877_v28, 0.0 }
 0x2a0   : > { %v1566_v29 = vsel %vm878_vm3, 1.0, %v1940_v0 }
 0x2a1   : > { %v881_v30 = vadd.f32 %v1566_v29, %v877_v28 }
 0x2a3   : > { %v882_v31 = vadd.f32 1e-20, %v881_v30 }
 0x2a5   : > { %1756 = vrcp.f32 %v882_v31 }
 0x2af   : > { %v1757_v33 = vpop.eup %1756 }
 0x2b0   : > { %v884_v34 = vmul.f32 %v1757_v33, %v405_v32 }
 0x2b2   : > { %887 = vperm.xlu1 %1752, %v884_v34  }
 0x331   : > { %v888_v38 = vpop.permute.xlu1 %887 }
 0x332   : > { %v890_v39 = vmul.f32 %v888_v38, %v874_v25 }
 0x334   : > { %v892_v40 = vsel %vm867_vm2, %v890_v39, 0  ;;  %1341 = vst.msk [vmem:[%s383_s27] sm:$0xff] %vm867_vm2, %v890_v39 }
 0x335   : > { %v960_v42 = vand.u32 4294901760, %v892_v40 }
 0x337   : > { %v961_v43 = vsub.f32 %v892_v40, %v960_v42 }
 0x339   : > { %v962_v45 = vand.u32 4294901760, %v961_v43 }
 0x33b   : > { %v963_v46 = vsub.f32 %v961_v43, %v962_v45 }
 0x33d   : > { %v964_v48 = vand.u32 4294901760, %v963_v46 }
 0x33f   : > { %1630 = vmatmul.mubr.f32.vlgmr.msra.gmra.mrb[0].mxu1 %v964_v48 }
 0x340   : > { %1633 = vmatpush3.msra.mxu1 %v975_v47  ;;  %1634 = vmatprep.mubr.msk.f32.mxu1 %vm1941_vm0, %v1940_v0 }
 0x341   : > { %1637 = vmatprep.subr.mxu1 %v1940_v0 }
 0x347   : > { %1635 = vmatmul.mubr.f32.vlgmr.msra.gmra.mrb[0].mxu1 %v960_v42 }
 0x348   : > { %1638 = vmatpush3.msra.mxu1 %v972_v37  ;;  %1639 = vmatprep.mubr.msk.f32.mxu1 %vm1941_vm0, %v1940_v0 }
 0x349   : > { %1642 = vmatprep.subr.mxu1 %v1940_v0 }
 0x34f   : > { %1640 = vmatmul.mubr.f32.vlgmr.msra.gmra.mrb[0].mxu1 %v961_v43 }
 0x350   : > { %1643 = vmatpush3.msra.mxu1 %v895_v36  ;;  %1644 = vmatprep.mubr.msk.f32.mxu1 %vm1941_vm0, %v1940_v0 }
 0x351   : > { %1647 = vmatprep.subr.mxu1 %v1940_v0 }
 0x357   : > { %1645 = vmatmul.mubr.f32.vlgmr.msra.gmra.mrb[0].mxu1 %v962_v45 }
 0x358   : > { %1648 = vmatpush3.msra.mxu1 %v973_v41  ;;  %1649 = vmatprep.mubr.msk.f32.mxu1 %vm1941_vm0, %v1940_v0 }
 0x359   : > { %1652 = vmatprep.subr.mxu1 %v1940_v0 }
 0x35f   : > { %1650 = vmatmul.mubr.f32.vlgmr.msra.gmra.mrb[0].mxu1 %v960_v42 }
 0x360   : > { %1653 = vmatpush3.msra.mxu1 %v895_v36  ;;  %1654 = vmatprep.mubr.msk.f32.mxu1 %vm1941_vm0, %v1940_v0 }
 0x367   : > { %1655 = vmatmul.mubr.f32.vlgmr.msra.gmra.mrb[0].mxu1 %v960_v42 }
 0x368   : > { %1831 = shalt.err (!%p1828_p9)
}
 0x369   : > { %s1832_s15 = scalar_lea.hbm %s2224_s17, 128  ;;  %s1836_s19 = scalar_lea.hbm %s2308_s6, 256 }
 0x36a   : > { %p1833_p11 = scmp.ne.s32.totalorder %s2224_s17, %s1832_s15  ;;  %p1837_p13 = scmp.lt.u32.totalorder %s2224_s17, %s2308_s6 }
 0x36b   : > { %p1838_p8 = scmp.lt.u32.totalorder %s1836_s19, %s1832_s15  ;;  %p1840_p5 = scmp.lt.u32.totalorder %s1832_s15, %s2224_s17 }
 0x36c   : > { %p1834_p3 = pnand %p1833_p11, %p2325_p7 }
 0x36d   : > { %p1839_p0 = por %p1838_p8, %p1837_p13 }
 0x36e   : > { %p1835_p6 = pneg %p1834_p3 }
 0x36f   : > { %p1841_p4 = por %p1840_p5, %p1839_p0 }
 0x371   : > { %p1842_p10 = pnand %p1841_p4, %p1835_p6 }
 0x373   : > { %1845 = shalt.err (!%p1842_p10)
}
 0x374   : > { %1682 = dma.vmem_to_hbm [thread:$0]  (%p2325_p7), %s1377_s18, 128, %s2224_s17, %s1348_s7  }
 0x375   : > { %s376_s13 = scalar_lea.vmem [#allocation7], %s2137_s28  ;;  %s2252_s27 = scalar_lea.hbm %s2307_s5, %s1569_s30 }
 0x376   : > { %s1362_s1 = sshll.u32 %s376_s13, 4  ;;  %s1343_s15 = scalar_lea.sflag [#allocation4], %s2134_s20  ;;  %s2254_s1 = int_to_ptr.vmem [resolvable:$true] %s1362_s1 }
 0x377   : > { %s1846_s19 = scalar_lea.vmem %s2254_s1, 128  ;;  %s1944_s24 = smov [#allocation7]  }
 0x378   : > { %p1847_p12 = scmp.ne.s32.totalorder %s2254_s1, %s1846_s19  ;;  %s1850_s28 = sshll.u32 %s1944_s24, 4  ;;  %s1851_s28 = int_to_ptr.vmem [resolvable:$false] %s1850_s28 }
 0x379   : > { %s1852_s30 = scalar_lea.vmem %s1851_s28, 256  ;;  %p1853_p9 = scmp.lt.s32.totalorder %s2254_s1, %s1851_s28 }
 0x37a   : > { %p1848_p1 = pnand %p1847_p12, %p2325_p7  ;;  %p1854_p11 = scmp.lt.s32.totalorder %s1852_s30, %s1846_s19 }
 0x37c   : > { %p1849_p2 = pneg %p1848_p1  ;;  %p1855_p3 = por %p1854_p11, %p1853_p9 }
 0x37e   : > { %p1856_p6 = pnand %p1855_p3, %p1849_p2 }
 0x43a   : > { %v1336_v49 = vpop.f32.mrb[0].mxu1 }
 0x43b   : > { %1340 = vst.msk [vmem:[%s376_s13] sm:$0xff] %vm407_vm1, %v1336_v49  ;;  %v1656_v50 = vpop.f32.mrb[1].mxu1 }
 0x43c   : > { %1859 = shalt.err (!%p1856_p6)
}
 0x43d   : > { %s1860_s20 = scalar_lea.hbm %s2252_s27, 128  ;;  %s1864_s7 = scalar_lea.hbm %s2307_s5, 256 }
 0x43e   : > { %p1861_p13 = scmp.ne.s32.totalorder %s2252_s27, %s1860_s20  ;;  %p1865_p5 = scmp.lt.u32.totalorder %s2252_s27, %s2307_s5 }
 0x43f   : > { %p1866_p4 = scmp.lt.u32.totalorder %s1864_s7, %s1860_s20  ;;  %p1868_p12 = scmp.lt.u32.totalorder %s1860_s20, %s2252_s27 }
 0x440   : > { %p1862_p8 = pnand %p1861_p13, %p2325_p7 }
 0x441   : > { %p1867_p10 = por %p1866_p4, %p1865_p5 }
 0x442   : > { %p1863_p0 = pneg %p1862_p8 }
 0x443   : > { %p1869_p1 = por %p1868_p12, %p1867_p10 }
 0x445   : > { %p1870_p2 = pnand %p1869_p1, %p1863_p0 }
 0x447   : > { %1873 = shalt.err (!%p1870_p2)
}
 0x448   : > { %1681 = dma.vmem_to_hbm [thread:$0]  (%p2325_p7), %s2254_s1, 128, %s2252_s27, %s1343_s15  }
 0x449 PF: > { %s1388_s13 = sand.u32 1, %s1916_s21   ;;  %p2326_p9 = scmp.ne.s32.totalorder %s2316_s12, 0 }
 0x44a   : > { %p2327_p11 = scmp.ge.s32.totalorder %s1936_s26, 2  ;;  %s1389_s16 = scalar_lea.sflag [#allocation4], %s1388_s13 }
 0x44c   : > { %p1693_p3 = pnand %p2327_p11, %p2326_p9 }
 0x44e   : > { %1907 = dma.done.wait (!%p1693_p3), %s1389_s16, 128  }
 0x44f   : > { %1909 = vsyncadd (!%p1693_p3), %s1389_s16, 4294967168  ;;  %s1398_s14 = scalar_lea.sflag [#allocation9], %s1388_s13 }
 0x450   : > { %1911 = dma.done.wait (!%p1693_p3), %s1398_s14, 128  }
 0x451   : > { %1913 = vsyncadd (!%p1693_p3), %s1398_s14, 4294967168  ;;  %s29_s26 = sadd.s32 1, %s1936_s26   ;;  %s2328_s21 = smov %s1920_s22 }
 0x452   : > { %p26_p6 = scmp.ge.s32.totalorder %s29_s26, 4   ;;  %s2329_s22 = smov %s1924_s23 }
 0x453   : > { %s2330_s23 = smov %s2036_s11  ;;  %s2331_s24 = smov %s1932_s25 }
 0x454   : > { %s2332_s25 = smov %s2334_s29  ;;  %28 = sbr.rel (!%p26_p6) target bundleno = 12 (0xc), region = 124 }
 0x45b   :  { %1403 = vsyncpa [#allocation3], 1 }
 0x45c   :  { %1405 = vsyncpa [#allocation3 + $0x1], 1 }
 0x45d   :  { %1406 = vsyncpa [#allocation6], 1 }
 0x45e   :  { %1408 = vsyncpa [#allocation6 + $0x1], 1 }
 0x45f   :  { %1409 = vsyncpa [#allocation4], 1 }
 0x460   :  { %1411 = vsyncpa [#allocation4 + $0x1], 1 }
 0x461   :  { %1412 = vsyncpa [#allocation9], 1 }
 0x462   :  { %1414 = vsyncpa [#allocation9 + $0x1], 1 }

</bundles_post_ra>
